<compile_context>
chip_gen: v7x
topology: tpu7x:2x2x1
jax: 0.10.0
libtpu: 0.0.40
codegen_flags: <defaults>
</compile_context>

<pallas_src>
import jax
import jax.numpy as jnp
from jax.experimental import pallas as pl
from jax.experimental.pallas import tpu as pltpu


def _disc_kernel(x_ref, w1_ref, b1_ref, w2_ref, b2_ref,
                 w3_ref, b3_ref, w4_ref, b4_ref, o_ref):
    # x_ref: (C_in, TN) f32, feature-major (points along lanes).
    # w*_ref: (out, in); w1/b* in f32, w2..w4 in bf16. b*: (out, 1) f32.
    c_in, _ = x_ref.shape
    x = x_ref[...]

    # ---- Layer 1: K = C_in is tiny -> VPU broadcast-FMAs (f32), keep the
    #      MXU free for the layers that carry >95% of the FLOPs.
    if c_in <= 16:
        h = b1_ref[...]                                   # (64, 1)
        for c in range(c_in):                             # static unroll
            h = h + w1_ref[:, c:c + 1] * x[c:c + 1, :]    # -> (64, TN)
    else:  # fallback for wide inputs: regular MXU matmul
        h = jnp.dot(w1_ref[...].astype(jnp.bfloat16), x.astype(jnp.bfloat16),
                    preferred_element_type=jnp.float32) + b1_ref[...]
    h = jnp.maximum(h, 0.0)                               # (64, TN) f32

    # ---- Layers 2-4: MXU, bf16 operands, f32 accumulation, f32 bias+ReLU.
    h = jnp.dot(w2_ref[...], h.astype(jnp.bfloat16),
                preferred_element_type=jnp.float32)
    h = jnp.maximum(h + b2_ref[...], 0.0)                 # (64, TN)
    h = jnp.dot(w3_ref[...], h.astype(jnp.bfloat16),
                preferred_element_type=jnp.float32)
    h = jnp.maximum(h + b3_ref[...], 0.0)                 # (64, TN)
    h = jnp.dot(w4_ref[...], h.astype(jnp.bfloat16),
                preferred_element_type=jnp.float32)
    h = jnp.maximum(h + b4_ref[...], 0.0)                 # (128, TN)

    # Channel max -> one scalar per point; lane-dense (1, TN) store.
    o_ref[...] = jnp.max(h, axis=0, keepdims=True)


def _round_up(a, b):
    return ((a + b - 1) // b) * b


def pointwise_disc_net(x, params, *, tn=2048):
    """Forward of PointwiseDiscNet. x: (B, C_in, N) f32 (PyTorch NCL) -> (B, N)."""
    B, C_in, N = x.shape

    # Point tile along lanes: big (amortizes grid-step overhead) but clamped
    # to the (128-rounded) input so tiny inputs still work; pad the tail.
    tn = max(128, min(tn, _round_up(N, 128)))
    n_pad = _round_up(N, tn)
    if n_pad != N:
        x = jnp.pad(x, ((0, 0), (0, 0), (0, n_pad - N)))

    (w1, b1), (w2, b2), (w3, b3), (w4, b4) = params
    # Feature-major compute h_l = W_l @ h_{l-1}: PyTorch Conv1d(k=1) weights
    # (out, in) are used as-is, no transpose needed.
    w1f = w1.astype(jnp.float32)                       # layer 1 runs on the VPU
    w2b, w3b, w4b = (w.astype(jnp.bfloat16) for w in (w2, w3, w4))
    b1c, b2c, b3c, b4c = (b.reshape(-1, 1).astype(jnp.float32)
                          for b in (b1, b2, b3, b4))

    full = lambda a: pl.BlockSpec(a.shape, lambda b, j: (0, 0))

    flops = 2 * B * n_pad * (C_in * 64 + 64 * 64 + 64 * 64 + 64 * 128)
    bytes_accessed = (int(x.size) * 4 + B * n_pad * 4
                      + int(w1f.size) * 4
                      + sum(int(w.size) * 2 for w in (w2b, w3b, w4b))
                      + sum(int(b.size) * 4 for b in (b1c, b2c, b3c, b4c)))

    out = pl.pallas_call(
        _disc_kernel,
        out_shape=jax.ShapeDtypeStruct((B, 1, n_pad), jnp.float32),
        grid_spec=pltpu.PrefetchScalarGridSpec(
            num_scalar_prefetch=0,
            grid=(B, n_pad // tn),
            in_specs=[
                # x tile: (C_in, TN), batch dim squeezed out.
                pl.BlockSpec((None, C_in, tn), lambda b, j: (b, 0, j)),
                full(w1f), full(b1c),
                full(w2b), full(b2c),
                full(w3b), full(b3c),
                full(w4b), full(b4c),
            ],
            # Lane-dense (1, TN) output block straight into (B, 1, N_pad).
            out_specs=pl.BlockSpec((None, 1, tn), lambda b, j: (b, 0, j)),
        ),
        compiler_params=pltpu.CompilerParams(
            dimension_semantics=("parallel", "parallel")),
        cost_estimate=pl.CostEstimate(
            flops=flops, transcendentals=0, bytes_accessed=bytes_accessed),
    )(x, w1f, b1c, w2b, b2c, w3b, b3c, w4b, b4c)

    return out.reshape(B, n_pad)[:, :N]


def init_params(key, input_dim):
    """Deterministic synthetic params matching the module's shapes."""
    dims = [(64, input_dim), (64, 64), (64, 64), (128, 64)]
    params = []
    for i, (out_d, in_d) in enumerate(dims):
        kw, kb = jax.random.split(jax.random.fold_in(key, i))
        scale = 1.0 / jnp.sqrt(in_d)
        w = jax.random.uniform(kw, (out_d, in_d), jnp.float32, -scale, scale)
        b = jax.random.uniform(kb, (out_d,), jnp.float32, -scale, scale)
        params.append((w, b))
    return params


def reference(x, params):
    h = jnp.transpose(x, (0, 2, 1))  # (B, N, C_in)
    for (w, b) in params:
        h = jnp.maximum(jnp.einsum("bnc,oc->bno", h, w) + b, 0.0)
    return jnp.max(h, axis=-1)       # (B, N)


if __name__ == "__main__":
    key = jax.random.PRNGKey(0)
    # Small shapes; N=200 is deliberately not a multiple of 128 to exercise
    # the pad-and-slice path.
    B, input_dim, input_pts = 2, 4, 200

    kx, kp = jax.random.split(key)
    x = jax.random.normal(kx, (B, input_dim, input_pts), jnp.float32)
    params = init_params(kp, input_dim)

    out = jax.block_until_ready(pointwise_disc_net(x, params))
    ref = reference(x, params)

    assert out.shape == (B, input_pts)
    # bf16 MXU matmuls with f32 accumulation vs. the pure-f32 reference:
    # loosen the tolerance accordingly.
    assert jnp.allclose(out, ref, atol=3e-2, rtol=3e-2), (
        float(jnp.max(jnp.abs(out - ref))))

    print("KERNEL_OK")
</pallas_src>

<mosaic_0001>
module attributes {stable_mosaic.version = 11 : i64} {
  func.func @_disc_kernel(%arg0: i32, %arg1: i32, %arg2: memref<1x4x256xf32, #tpu.memory_space<vmem>>, %arg3: memref<64x4xf32, #tpu.memory_space<vmem>>, %arg4: memref<64x1xf32, #tpu.memory_space<vmem>>, %arg5: memref<64x64xbf16, #tpu.memory_space<vmem>>, %arg6: memref<64x1xf32, #tpu.memory_space<vmem>>, %arg7: memref<64x64xbf16, #tpu.memory_space<vmem>>, %arg8: memref<64x1xf32, #tpu.memory_space<vmem>>, %arg9: memref<128x64xbf16, #tpu.memory_space<vmem>>, %arg10: memref<128x1xf32, #tpu.memory_space<vmem>>, %arg11: memref<1x1x256xf32, #tpu.memory_space<vmem>>) attributes {dimension_semantics = [#tpu.dimension_semantics<parallel>, #tpu.dimension_semantics<parallel>], iteration_bounds = array<i64: 2, 1>, scalar_prefetch = 0 : i64, scratch_operands = 0 : i64, tpu.core_type = #tpu.core_type<tc>, window_params = [{transform_indices = @transform_0, window_bounds = array<i64: 1, 4, 256>}, {pipeline_mode = #tpu.pipeline_mode<synchronous>, transform_indices = @transform_1, window_bounds = array<i64: 64, 4>}, {pipeline_mode = #tpu.pipeline_mode<synchronous>, transform_indices = @transform_2, window_bounds = array<i64: 64, 1>}, {pipeline_mode = #tpu.pipeline_mode<synchronous>, transform_indices = @transform_3, window_bounds = array<i64: 64, 64>}, {pipeline_mode = #tpu.pipeline_mode<synchronous>, transform_indices = @transform_4, window_bounds = array<i64: 64, 1>}, {pipeline_mode = #tpu.pipeline_mode<synchronous>, transform_indices = @transform_5, window_bounds = array<i64: 64, 64>}, {pipeline_mode = #tpu.pipeline_mode<synchronous>, transform_indices = @transform_6, window_bounds = array<i64: 64, 1>}, {pipeline_mode = #tpu.pipeline_mode<synchronous>, transform_indices = @transform_7, window_bounds = array<i64: 128, 64>}, {pipeline_mode = #tpu.pipeline_mode<synchronous>, transform_indices = @transform_8, window_bounds = array<i64: 128, 1>}, {transform_indices = @transform_9, window_bounds = array<i64: 1, 1, 256>}]} {
    %c0 = arith.constant 0 : index
    %c0_0 = arith.constant 0 : index
    %c0_1 = arith.constant 0 : index
    %0 = vector.load %arg2[%c0, %c0_0, %c0_1] : memref<1x4x256xf32, #tpu.memory_space<vmem>>, vector<1x4x256xf32>
    %1 = vector.shape_cast %0 : vector<1x4x256xf32> to vector<4x256xf32>
    %c0_2 = arith.constant 0 : index
    %c0_3 = arith.constant 0 : index
    %2 = vector.load %arg4[%c0_2, %c0_3] : memref<64x1xf32, #tpu.memory_space<vmem>>, vector<64x1xf32>
    %c0_4 = arith.constant 0 : index
    %c0_5 = arith.constant 0 : index
    %3 = vector.load %arg3[%c0_4, %c0_5] : memref<64x4xf32, #tpu.memory_space<vmem>>, vector<64x1xf32>
    %4 = vector.extract_strided_slice %1 {offsets = [0, 0], sizes = [1, 256], strides = [1, 1]} : vector<4x256xf32> to vector<1x256xf32>
    %5 = vector.broadcast %3 : vector<64x1xf32> to vector<64x256xf32>
    %6 = vector.broadcast %4 : vector<1x256xf32> to vector<64x256xf32>
    %7 = arith.mulf %5, %6 : vector<64x256xf32>
    %8 = vector.broadcast %2 : vector<64x1xf32> to vector<64x256xf32>
    %9 = arith.addf %8, %7 : vector<64x256xf32>
    %c0_6 = arith.constant 0 : index
    %c1 = arith.constant 1 : index
    %10 = vector.load %arg3[%c0_6, %c1] : memref<64x4xf32, #tpu.memory_space<vmem>>, vector<64x1xf32>
    %11 = vector.extract_strided_slice %1 {offsets = [1, 0], sizes = [1, 256], strides = [1, 1]} : vector<4x256xf32> to vector<1x256xf32>
    %12 = vector.broadcast %10 : vector<64x1xf32> to vector<64x256xf32>
    %13 = vector.broadcast %11 : vector<1x256xf32> to vector<64x256xf32>
    %14 = arith.mulf %12, %13 : vector<64x256xf32>
    %15 = arith.addf %9, %14 : vector<64x256xf32>
    %c0_7 = arith.constant 0 : index
    %c2 = arith.constant 2 : index
    %16 = vector.load %arg3[%c0_7, %c2] : memref<64x4xf32, #tpu.memory_space<vmem>>, vector<64x1xf32>
    %17 = vector.extract_strided_slice %1 {offsets = [2, 0], sizes = [1, 256], strides = [1, 1]} : vector<4x256xf32> to vector<1x256xf32>
    %18 = vector.broadcast %16 : vector<64x1xf32> to vector<64x256xf32>
    %19 = vector.broadcast %17 : vector<1x256xf32> to vector<64x256xf32>
    %20 = arith.mulf %18, %19 : vector<64x256xf32>
    %21 = arith.addf %15, %20 : vector<64x256xf32>
    %c0_8 = arith.constant 0 : index
    %c3 = arith.constant 3 : index
    %22 = vector.load %arg3[%c0_8, %c3] : memref<64x4xf32, #tpu.memory_space<vmem>>, vector<64x1xf32>
    %23 = vector.extract_strided_slice %1 {offsets = [3, 0], sizes = [1, 256], strides = [1, 1]} : vector<4x256xf32> to vector<1x256xf32>
    %24 = vector.broadcast %22 : vector<64x1xf32> to vector<64x256xf32>
    %25 = vector.broadcast %23 : vector<1x256xf32> to vector<64x256xf32>
    %26 = arith.mulf %24, %25 : vector<64x256xf32>
    %27 = arith.addf %21, %26 : vector<64x256xf32>
    %cst = arith.constant 0.000000e+00 : f32
    %28 = vector.broadcast %cst : f32 to vector<64x256xf32>
    %29 = arith.maximumf %27, %28 : vector<64x256xf32>
    %c0_9 = arith.constant 0 : index
    %c0_10 = arith.constant 0 : index
    %30 = vector.load %arg5[%c0_9, %c0_10] : memref<64x64xbf16, #tpu.memory_space<vmem>>, vector<64x64xbf16>
    %31 = arith.truncf %29 : vector<64x256xf32> to vector<64x256xbf16>
    %cst_11 = arith.constant dense<0.000000e+00> : vector<64x256xf32>
    %32 = tpu.matmul %30, %31, %cst_11 {dimension_numbers = #tpu.dot_dimension_numbers<[1], [0], [0], [1], [0, 0, 1, 1], [], []>} : vector<64x64xbf16>, vector<64x256xbf16>, vector<64x256xf32> -> vector<64x256xf32>
    %c0_12 = arith.constant 0 : index
    %c0_13 = arith.constant 0 : index
    %33 = vector.load %arg6[%c0_12, %c0_13] : memref<64x1xf32, #tpu.memory_space<vmem>>, vector<64x1xf32>
    %34 = vector.broadcast %33 : vector<64x1xf32> to vector<64x256xf32>
    %35 = arith.addf %32, %34 : vector<64x256xf32>
    %cst_14 = arith.constant 0.000000e+00 : f32
    %36 = vector.broadcast %cst_14 : f32 to vector<64x256xf32>
    %37 = arith.maximumf %35, %36 : vector<64x256xf32>
    %c0_15 = arith.constant 0 : index
    %c0_16 = arith.constant 0 : index
    %38 = vector.load %arg7[%c0_15, %c0_16] : memref<64x64xbf16, #tpu.memory_space<vmem>>, vector<64x64xbf16>
    %39 = arith.truncf %37 : vector<64x256xf32> to vector<64x256xbf16>
    %cst_17 = arith.constant dense<0.000000e+00> : vector<64x256xf32>
    %40 = tpu.matmul %38, %39, %cst_17 {dimension_numbers = #tpu.dot_dimension_numbers<[1], [0], [0], [1], [0, 0, 1, 1], [], []>} : vector<64x64xbf16>, vector<64x256xbf16>, vector<64x256xf32> -> vector<64x256xf32>
    %c0_18 = arith.constant 0 : index
    %c0_19 = arith.constant 0 : index
    %41 = vector.load %arg8[%c0_18, %c0_19] : memref<64x1xf32, #tpu.memory_space<vmem>>, vector<64x1xf32>
    %42 = vector.broadcast %41 : vector<64x1xf32> to vector<64x256xf32>
    %43 = arith.addf %40, %42 : vector<64x256xf32>
    %cst_20 = arith.constant 0.000000e+00 : f32
    %44 = vector.broadcast %cst_20 : f32 to vector<64x256xf32>
    %45 = arith.maximumf %43, %44 : vector<64x256xf32>
    %c0_21 = arith.constant 0 : index
    %c0_22 = arith.constant 0 : index
    %46 = vector.load %arg9[%c0_21, %c0_22] : memref<128x64xbf16, #tpu.memory_space<vmem>>, vector<128x64xbf16>
    %47 = arith.truncf %45 : vector<64x256xf32> to vector<64x256xbf16>
    %cst_23 = arith.constant dense<0.000000e+00> : vector<128x256xf32>
    %48 = tpu.matmul %46, %47, %cst_23 {dimension_numbers = #tpu.dot_dimension_numbers<[1], [0], [0], [1], [0, 0, 1, 1], [], []>} : vector<128x64xbf16>, vector<64x256xbf16>, vector<128x256xf32> -> vector<128x256xf32>
    %c0_24 = arith.constant 0 : index
    %c0_25 = arith.constant 0 : index
    %49 = vector.load %arg10[%c0_24, %c0_25] : memref<128x1xf32, #tpu.memory_space<vmem>>, vector<128x1xf32>
    %50 = vector.broadcast %49 : vector<128x1xf32> to vector<128x256xf32>
    %51 = arith.addf %48, %50 : vector<128x256xf32>
    %cst_26 = arith.constant 0.000000e+00 : f32
    %52 = vector.broadcast %cst_26 : f32 to vector<128x256xf32>
    %53 = arith.maximumf %51, %52 : vector<128x256xf32>
    %cst_27 = arith.constant dense<0xFF800000> : vector<256xf32>
    %54 = vector.multi_reduction <maximumf>, %53, %cst_27 [0] : vector<128x256xf32> to vector<256xf32>
    %55 = vector.shape_cast %54 : vector<256xf32> to vector<1x256xf32>
    %c0_28 = arith.constant 0 : index
    %c0_29 = arith.constant 0 : index
    %c0_30 = arith.constant 0 : index
    %56 = vector.load %arg11[%c0_28, %c0_29, %c0_30] : memref<1x1x256xf32, #tpu.memory_space<vmem>>, vector<1x1x256xf32>
    %57 = vector.shape_cast %56 : vector<1x1x256xf32> to vector<1x256xf32>
    %58 = vector.shape_cast %55 : vector<1x256xf32> to vector<1x1x256xf32>
    tpu.vector_store %arg11[%c0_28, %c0_29, %c0_30], %58 {strides = array<i32>} : memref<1x1x256xf32, #tpu.memory_space<vmem>>, vector<1x1x256xf32>,
    return
  }
  func.func @transform_0(%arg0: i32, %arg1: i32) -> (i32, i32, i32) {
    %c0_i32 = arith.constant 0 : i32
    %c0_i32_0 = arith.constant 0 : i32
    return %arg0, %c0_i32, %arg1 : i32, i32, i32
  }
  func.func @transform_1(%arg0: i32, %arg1: i32) -> (i32, i32) {
    %c0_i32 = arith.constant 0 : i32
    %c0_i32_0 = arith.constant 0 : i32
    %c0_i32_1 = arith.constant 0 : i32
    return %c0_i32, %c0_i32_0 : i32, i32
  }
  func.func @transform_2(%arg0: i32, %arg1: i32) -> (i32, i32) {
    %c0_i32 = arith.constant 0 : i32
    %c0_i32_0 = arith.constant 0 : i32
    %c0_i32_1 = arith.constant 0 : i32
    return %c0_i32, %c0_i32_0 : i32, i32
  }
  func.func @transform_3(%arg0: i32, %arg1: i32) -> (i32, i32) {
    %c0_i32 = arith.constant 0 : i32
    %c0_i32_0 = arith.constant 0 : i32
    %c0_i32_1 = arith.constant 0 : i32
    return %c0_i32, %c0_i32_0 : i32, i32
  }
  func.func @transform_4(%arg0: i32, %arg1: i32) -> (i32, i32) {
    %c0_i32 = arith.constant 0 : i32
    %c0_i32_0 = arith.constant 0 : i32
    %c0_i32_1 = arith.constant 0 : i32
    return %c0_i32, %c0_i32_0 : i32, i32
  }
  func.func @transform_5(%arg0: i32, %arg1: i32) -> (i32, i32) {
    %c0_i32 = arith.constant 0 : i32
    %c0_i32_0 = arith.constant 0 : i32
    %c0_i32_1 = arith.constant 0 : i32
    return %c0_i32, %c0_i32_0 : i32, i32
  }
  func.func @transform_6(%arg0: i32, %arg1: i32) -> (i32, i32) {
    %c0_i32 = arith.constant 0 : i32
    %c0_i32_0 = arith.constant 0 : i32
    %c0_i32_1 = arith.constant 0 : i32
    return %c0_i32, %c0_i32_0 : i32, i32
  }
  func.func @transform_7(%arg0: i32, %arg1: i32) -> (i32, i32) {
    %c0_i32 = arith.constant 0 : i32
    %c0_i32_0 = arith.constant 0 : i32
    %c0_i32_1 = arith.constant 0 : i32
    return %c0_i32, %c0_i32_0 : i32, i32
  }
  func.func @transform_8(%arg0: i32, %arg1: i32) -> (i32, i32) {
    %c0_i32 = arith.constant 0 : i32
    %c0_i32_0 = arith.constant 0 : i32
    %c0_i32_1 = arith.constant 0 : i32
    return %c0_i32, %c0_i32_0 : i32, i32
  }
  func.func @transform_9(%arg0: i32, %arg1: i32) -> (i32, i32, i32) {
    %c0_i32 = arith.constant 0 : i32
    %c0_i32_0 = arith.constant 0 : i32
    return %arg0, %c0_i32, %arg1 : i32, i32, i32
  }
}

</mosaic_0001>

<bundles_post_ra>
// kernel: tpu_custom_call.1
= control target key start
LH: loop header
LB: loop body
LE: loop exit
PB: predicated region body
PF: predicated region fallthrough
CT: control target
= control target key end

     0   :  { %14 = vsyncpa [#allocation3], 0  ;;  %s2439_s0 = inlined_call_operand.vmem [shape: f32[2,4,256], index: 0, kind: input, shape index: {}]   ;;  %s2440_s1 = inlined_call_operand.vmem [shape: f32[64,4], index: 1, kind: input, shape index: {}]   ;;  %s2441_s2 = inlined_call_operand.vmem [shape: f32[64,1], index: 2, kind: input, shape index: {}]   ;;  %s2442_s3 = inlined_call_operand.vmem [shape: bf16[64,64], index: 3, kind: input, shape index: {}]   ;;  %s2443_s4 = inlined_call_operand.vmem [shape: f32[64,1], index: 4, kind: input, shape index: {}]   ;;  %s2444_s5 = inlined_call_operand.vmem [shape: bf16[64,64], index: 5, kind: input, shape index: {}]   ;;  %s2445_s6 = inlined_call_operand.vmem [shape: f32[64,1], index: 6, kind: input, shape index: {}]   ;;  %s2446_s7 = inlined_call_operand.vmem [shape: bf16[128,64], index: 7, kind: input, shape index: {}]   ;;  %s2447_s8 = inlined_call_operand.vmem [shape: f32[128,1], index: 8, kind: input, shape index: {}]   ;;  %s2448_s9 = inlined_call_operand.hbm [shape: f32[2,1,256], index: 9, kind: output, shape index: {}]  }
   0x1   :  { %16 = vsyncpa [#allocation3 + $0x1], 0  ;;  %s1915_s30 = smov 0   ;;  %s1917_s10 = smov 0  }
   0x2   :  { %s1919_s11 = smov 0   ;;  %s1921_s12 = smov 0  }
   0x3   :  { %s1923_s13 = smov 0   ;;  %s1925_s14 = smov 0  }
   0x4 LB: > { %s1631_s15 = sadd.s32 4294967295, %s1857_s14   ;;  %s1632_s16 = sadd.s32 4294967294, %s1857_s14   ;;  %s1857_s14 = sphi %s1925_s14, %s22_s14   ;;  %s1853_s13 = sphi %s1923_s13, %s2455_s13   ;;  %s1849_s12 = sphi %s1921_s12, %s2454_s12   ;;  %s1845_s11 = sphi %s1919_s11, %s2453_s11   ;;  %s1841_s10 = sphi %s1917_s10, %s2452_s10   ;;  %s1837_s30 = sphi %s1915_s30, %s2451_s30  }
   0x5   : > { %s34_s17 = sadd.s32 1, %s1853_s13  ;;  %s239_s18 = sadd.s32 1, %s1845_s11 }
   0x6   : > { %p36_p0 = scmp.ge.s32.totalorder %s34_s17, 2  ;;  %p249_p1 = scmp.ne.s32.totalorder %s1845_s11, %s1841_s10 }
   0x7   : > { %p250_p2 = scmp.eq.s32.totalorder %s1631_s15, 1  ;;  %p255_p3 = scmp.ne.s32.totalorder %s1841_s10, %s1837_s30 }
   0x8   : > { %s2457_s17 = smov (%p36_p0, %s34_s17), 0  ;;  %p256_p5 = scmp.eq.s32.totalorder %s1632_s16, 1 }
   0x9   : > { %p1955_p4 = por %p250_p2, %p249_p1  ;;  %s234_s20 = ssub.s32 %s1853_s13, %s2457_s17 }
   0xa   : > { %p1635_p6 = scmp.ge.s32.totalorder %s1857_s14, 1  ;;  %p237_p7 = scmp.eq.s32.totalorder %s234_s20, 0 }
   0xb   : > { %p1962_p8 = por %p256_p5, %p255_p3  ;;  %p311_p9 = scmp.lt.s32.totalorder %s1857_s14, 3 }
   0xc   : > { %s1968_s22 = scalar_select %p237_p7, %s1845_s11, %s239_s18  }
   0xd   : > { %p312_p10 = pnand %p1635_p6, %p311_p9 }
   0xe   : > { %v374_v0 = vld [vmem:[%s2440_s1 + $0x10] sm:$0xff] (!%p312_p10)  ;;  %v364_v1 = vld [vmem:[%s2441_s2] sm:$0xff] (!%p312_p10)  ;;  %v1859_v2 = vmov (!%p312_p10), 2   ;;  %v1860_v3 = vmov (!%p312_p10), 0   ;;  %v365_v4 = vld [vmem:[%s2441_s2 + $0x8] sm:$0xff] (!%p312_p10)  ;;  %v1861_v7 = vmov (!%p312_p10), 1   ;;  %v421_v26 = vlaneseq (!%p312_p10) }
   0xf   : > { %315 = sbr.rel (%p312_p10) target bundleno = 1079 (0x437), region = 56  ;;  %1746 = vset.pattern.permute.xlu0 (!%p312_p10), %v1859_v2  ;;  %1738 = vset.pattern.permute.xlu1 (!%p312_p10), %v1860_v3  ;;  %v372_v5 = vld [vmem:[%s2440_s1] sm:$0xff] (!%p312_p10)  ;;  %v373_v6 = vld [vmem:[%s2440_s1 + $0x8] sm:$0xff] (!%p312_p10)  ;;  %v375_v8 = vld [vmem:[%s2440_s1 + $0x18] sm:$0xff] (!%p312_p10)  ;;  %v1862_v14 = vmov (!%p312_p10), 3   ;;  %p352_p11 = scmp.lt.s32.totalorder (!%p312_p10), %s1849_s12, 1 }
  0x10   : > { %602 = vperm.xlu0 (!%p312_p10), %1746, %v374_v0   ;;  %457 = vperm.xlu1 (!%p312_p10), %1738, %v364_v1   ;;  %v366_v9 = vld [vmem:[%s2441_s2 + $0x10] sm:$0xff] (!%p312_p10)  ;;  %v369_v10 = vld [vmem:[%s2441_s2 + $0x28] sm:$0xff] (!%p312_p10)  ;;  %v379_v11 = vld [vmem:[%s2440_s1 + $0x38] sm:$0xff] (!%p312_p10)  ;;  %v2050_v29 = vshrl.u32 (!%p312_p10), %v421_v26, 7  ;;  %vm857_vm0 = vcmask (!%p312_p10), 523264   ;;  %s348_s24 = sand.u32 (!%p312_p10), 1, %s1841_s10  }
  0x11   : > { %902 = vmatprep.mubr.bf16.mxu1 (!%p312_p10), %v1860_v3  ;;  %1360 = vmatprep.mubr.bf16.mxu0 (!%p312_p10), %v1860_v3  ;;  %v367_v12 = vld [vmem:[%s2441_s2 + $0x18] sm:$0xff] (!%p312_p10)  ;;  %v370_v13 = vld [vmem:[%s2441_s2 + $0x30] sm:$0xff] (!%p312_p10)  ;;  %v376_v16 = vld [vmem:[%s2440_s1 + $0x20] sm:$0xff] (!%p312_p10)  ;;  %s1636_s25 = sshll.u32 (!%p312_p10), %s348_s24, 1  ;;  %vm1535_vm1 = vcmp.lt.s32.totalorder (!%p312_p10), %v421_v26, 256  ;;  %s1539_s18 = scalar_lea.sflag (!%p312_p10), [#allocation3], %s348_s24 }
  0x12   : > { %v378_v15 = vld [vmem:[%s2440_s1 + $0x30] sm:$0xff] (!%p312_p10)  ;;  %v377_v17 = vld [vmem:[%s2440_s1 + $0x28] sm:$0xff] (!%p312_p10)  ;;  %v368_v18 = vld [vmem:[%s2441_s2 + $0x20] sm:$0xff] (!%p312_p10)  ;;  %v423_v32 = vsub.s32 (!%p312_p10), 0, %v2050_v29  ;;  %v427_v35 = vsub.s32 (!%p312_p10), 4, %v2050_v29  ;;  %v545_v40 = vsub.s32 (!%p312_p10), 1, %v2050_v29 }
  0x13   : > { %v371_v19 = vld [vmem:[%s2441_s2 + $0x38] sm:$0xff] (!%p312_p10)  ;;  %v789_v37 = vld [vmem:[%s2443_s4] sm:$0xff] (!%p312_p10)  ;;  %v790_v38 = vld [vmem:[%s2443_s4 + $0x8] sm:$0xff] (!%p312_p10)  ;;  %v549_v45 = vsub.s32 (!%p312_p10), 5, %v2050_v29  ;;  %v627_v47 = vsub.s32 (!%p312_p10), 2, %v2050_v29  ;;  %v631_v53 = vsub.s32 (!%p312_p10), 6, %v2050_v29 }
  0x14   : > { %1747 = vset.pattern.permute.xlu0 (!%p312_p10), %v1860_v3  ;;  %462 = vperm.xlu1 (!%p312_p10), %1738, %v365_v4   ;;  %v792_v42 = vld [vmem:[%s2443_s4 + $0x18] sm:$0xff] (!%p312_p10)  ;;  %v791_v43 = vld [vmem:[%s2443_s4 + $0x10] sm:$0xff] (!%p312_p10)  ;;  %v794_v51 = vld [vmem:[%s2443_s4 + $0x28] sm:$0xff] (!%p312_p10)  ;;  %v709_v56 = vsub.s32 (!%p312_p10), 3, %v2050_v29  ;;  %v713_v57 = vsub.s32 (!%p312_p10), 7, %v2050_v29  ;;  %s350_s27 = scalar_lea.vmem (!%p312_p10), [#allocation2], %s1636_s25 }
  0x15   : > { %382 = vperm.xlu0 (!%p312_p10), %1747, %v372_v5   ;;  %v793_v52 = vld [vmem:[%s2443_s4 + $0x20] sm:$0xff] (!%p312_p10)  ;;  %v796_v62 = vld [vmem:[%s2443_s4 + $0x38] sm:$0xff] (!%p312_p10)  ;;  %v795_v63 = vld [vmem:[%s2443_s4 + $0x30] sm:$0xff] (!%p312_p10)  ;;  %s1555_s28 = sshll.u32 (!%p312_p10), %s350_s27, 4  ;;  %s2394_s28 = int_to_ptr.vmem [resolvable:$true] %s1555_s28 }
  0x16   : > { %s353_s20 = scalar_select %p352_p11, %s1849_s12, 1 }
  0x18   : > { %1739 = vset.pattern.permute.xlu1 %v1861_v7  ;;  %s1676_s23 = sshll.u32 %s353_s20, 3  ;;  %s1779_s20 = scalar_lea.vmem %s2394_s28, 32 }
  0x19   : > { %387 = vperm.xlu0 %1747, %v373_v6   ;;  %516 = vperm.xlu1 %1739, %v373_v6   ;;  %s359_s26 = scalar_lea.vmem %s2439_s0, %s1676_s23  ;;  %p1780_p12 = scmp.ne.s32.totalorder %s2394_s28, %s1779_s20 }
  0x1a   : > { %v363_v34 = vld [vmem:[%s359_s26] sm:$0xff]  ;;  %s1677_s26 = sshll.u32 %s1849_s12, 5  ;;  %s1864_s12 = smov [#allocation2]  }
  0x1b   : > { %v424_v39 = vrot.slane %v363_v34, %v423_v32  ;;  %v428_v44 = vrot.slane %v363_v34, %v427_v35  ;;  %v546_v49 = vrot.slane %v363_v34, %v545_v40  ;;  %v550_v55 = vrot.slane %v363_v34, %v549_v45  ;;  %s2392_s16 = scalar_lea.hbm %s2448_s9, %s1677_s26  ;;  %p1781_p13 = pnand %p1780_p12, %p1955_p4 }
  0x1c   : > { %v628_v58 = vrot.slane %v363_v34, %v627_v47  ;;  %s1783_s23 = sshll.u32 %s1864_s12, 4  ;;  %s1784_s23 = int_to_ptr.vmem [resolvable:$false] %s1783_s23 }
  0x1d   : > { %397 = vperm.xlu0 %1747, %v375_v8   ;;  %1740 = vset.pattern.permute.xlu1 %v1860_v3  ;;  %v2084_v48 = vrot.slane %v424_v39, %v423_v32  ;;  %v2095_v54 = vrot.slane %v428_v44, %v423_v32  ;;  %v2100_v60 = vrot.slane %v546_v49, %v545_v40  ;;  %p1782_p0 = pneg %p1781_p13  ;;  %s1785_s25 = scalar_lea.vmem %s1784_s23, 64 }
  0x1e   : > { %392 = vperm.xlu1 %1740, %v374_v0   ;;  %p1786_p1 = scmp.lt.s32.totalorder %s2394_s28, %s1784_s23  ;;  %p1787_p2 = scmp.lt.s32.totalorder %s1785_s25, %s1779_s20 }
  0x20   : > { %p1788_p3 = por %p1787_p2, %p1786_p1 }
  0x21   : > { %467 = vperm.xlu0 %1747, %v366_v9   ;;  %v2115_v9 = vrot.slane %v628_v58, %v627_v47 }
  0x22   : > { %1741 = vset.pattern.permute.xlu1 %v1859_v2  ;;  %p1789_p5 = pnand %p1788_p3, %p1782_p0 }
  0x23   : > { %594 = vperm.xlu1 %1741, %v372_v5  }
  0x25   : > { %482 = vperm.xlu0 %1747, %v369_v10  }
  0x27   : > { %598 = vperm.xlu1 %1741, %v373_v6  }
  0x29   : > { %417 = vperm.xlu0 %1747, %v379_v11  }
  0x2b   : > { %1742 = vset.pattern.permute.xlu1 %v1860_v3 }
  0x2c   : > { %472 = vperm.xlu1 %1742, %v367_v12  }
  0x2d   : > { %487 = vperm.xlu0 %1747, %v370_v13   ;;  %v976_v13 = vld [vmem:[%s2445_s6 + $0x8] sm:$0xff] }
  0x30   : > { %1743 = vset.pattern.permute.xlu1 %v1861_v7 }
  0x31   : > { %1754 = vset.pattern.permute.xlu0 %v1861_v7  ;;  %524 = vperm.xlu1 %1743, %v375_v8  }
  0x32   : > { %512 = vperm.xlu0 %1754, %v372_v5  }
  0x35   : > { %1744 = vset.pattern.permute.xlu1 %v1862_v14 }
  0x36   : > { %520 = vperm.xlu0 %1754, %v374_v0   ;;  %676 = vperm.xlu1 %1744, %v372_v5  }
  0x3a   : > { %536 = vperm.xlu0 %1754, %v378_v15   ;;  %1745 = vset.pattern.permute.xlu1 %v1860_v3 }
  0x3b   : > { %402 = vperm.xlu1 %1745, %v376_v16  }
  0x3e   : > { %1756 = vset.pattern.permute.xlu0 %v1862_v14 }
  0x3f   : > { %680 = vperm.xlu0 %1756, %v373_v6   ;;  %407 = vperm.xlu1 %1745, %v377_v17  }
  0x43   : > { %684 = vperm.xlu0 %1756, %v374_v0   ;;  %1748 = vset.pattern.permute.xlu1 %v1859_v2  ;;  %v632_v0 = vrot.slane %v363_v34, %v631_v53 }
  0x44   : > { %606 = vperm.xlu1 %1748, %v375_v8  }
  0x47   : > { %696 = vperm.xlu0 %1756, %v377_v17  }
  0x48   : > { %1749 = vset.pattern.permute.xlu1 %v1860_v3 }
  0x49   : > { %477 = vperm.xlu1 %1749, %v368_v18  }
  0x4b   : > { %700 = vperm.xlu0 %1756, %v378_v15  }
  0x4d   : > { %1750 = vset.pattern.permute.xlu1 %v1861_v7 }
  0x4e   : > { %528 = vperm.xlu1 %1750, %v376_v16  }
  0x4f   : > { %1761 = vset.pattern.permute.xlu0 %v1860_v3 }
  0x50   : > { %799 = vperm.xlu0 %1761, %v789_v37  }
  0x52   : > { %532 = vperm.xlu1 %1750, %v377_v17  }
  0x54   : > { %814 = vperm.xlu0 %1761, %v792_v42  }
  0x56   : > { %1751 = vset.pattern.permute.xlu1 %v1862_v14 }
  0x57   : > { %688 = vperm.xlu1 %1751, %v375_v8   ;;  %v714_v8 = vrot.slane %v363_v34, %v713_v57 }
  0x58   : > { %824 = vperm.xlu0 %1761, %v794_v51  }
  0x5b   : > { %1752 = vset.pattern.permute.xlu1 %v1860_v3 }
  0x5c   : > { %412 = vperm.xlu1 %1752, %v378_v15   ;;  %834 = vperm.xlu0 %1761, %v796_v62  }
  0x60   : > { %1753 = vset.pattern.permute.xlu1 %v1859_v2  ;;  %990 = vperm.xlu0 %1761, %v976_v13   ;;  %v1169_v13 = vld [vmem:[%s2447_s8 + $0x8] sm:$0xff] }
  0x61   : > { %610 = vperm.xlu1 %1753, %v376_v16  }
  0x65   : > { %614 = vperm.xlu1 %1753, %v377_v17  }
  0x69   : > { %1755 = vset.pattern.permute.xlu1 %v1860_v3 }
  0x6a   : > { %492 = vperm.xlu1 %1755, %v371_v19  }
  0x6e   : > { %1757 = vset.pattern.permute.xlu1 %v1861_v7  ;;  %v710_v7 = vrot.slane %v363_v34, %v709_v56 }
  0x6f   : > { %540 = vperm.xlu1 %1757, %v379_v11  }
  0x70   : > { %v2131_v32 = vrot.slane %v710_v7, %v709_v56 }
  0x73   : > { %1758 = vset.pattern.permute.xlu1 %v1862_v14 }
  0x74   : > { %692 = vperm.xlu1 %1758, %v376_v16  }
  0x78   : > { %1759 = vset.pattern.permute.xlu1 %v1859_v2  ;;  %v2111_v2 = vrot.slane %v550_v55, %v545_v40 }
  0x79   : > { %618 = vperm.xlu1 %1759, %v378_v15   ;;  %v2126_v15 = vrot.slane %v632_v0, %v627_v47 }
  0x7d   : > { %622 = vperm.xlu1 %1759, %v379_v11  }
  0x81   : > { %1760 = vset.pattern.permute.xlu1 %v1862_v14  ;;  %v975_v14 = vld [vmem:[%s2445_s6] sm:$0xff] }
  0x82   : > { %704 = vperm.xlu1 %1760, %v379_v11  }
  0x86   : > { %1762 = vset.pattern.permute.xlu1 %v1860_v3 }
  0x87   : > { %804 = vperm.xlu1 %1762, %v790_v38   ;;  %v977_v38 = vld [vmem:[%s2445_s6 + $0x10] sm:$0xff] }
  0x8b   : > { %809 = vperm.xlu1 %1762, %v791_v43  }
  0x8f   : > { %v2035_v20 = vpop.permute.xlu1 %457  ;;  %v2037_v21 = vpop.permute.xlu0 %602  ;;  %819 = vperm.xlu1 %1762, %v793_v52  }
  0x93   : > { %v2039_v22 = vpop.permute.xlu1 %462  ;;  %829 = vperm.xlu1 %1762, %v795_v63  }
  0x94   : > { %v383_v23 = vpop.permute.xlu0 %382 }
  0x95   : > { %v439_v59 = vmul.f32 %v2084_v48, %v383_v23  ;;  %v440_v1 = vmul.f32 %v2095_v54, %v383_v23 }
  0x97   : > { %v495_v10 = vadd.f32 %v2035_v20, %v439_v59  ;;  %v496_v16 = vadd.f32 %v2035_v20, %v440_v1  ;;  %985 = vperm.xlu1 %1762, %v975_v14   ;;  %v978_v20 = vld [vmem:[%s2445_s6 + $0x18] sm:$0xff] }
  0x98   : > { %v388_v24 = vpop.permute.xlu0 %387  ;;  %v2042_v25 = vpop.permute.xlu1 %516  ;;  %1000 = vperm.xlu0 %1761, %v978_v20   ;;  %v982_v1 = vld [vmem:[%s2445_s6 + $0x38] sm:$0xff] }
  0x99   : > { %v441_v11 = vmul.f32 %v2084_v48, %v388_v24  ;;  %v442_v12 = vmul.f32 %v2095_v54, %v388_v24  ;;  %v2133_v24 = vrot.slane %v714_v8, %v709_v56  ;;  %v563_v39 = vmul.f32 %v2100_v60, %v2042_v25 }
  0x9b   : > { %v497_v34 = vadd.f32 %v2039_v22, %v441_v11  ;;  %v498_v35 = vadd.f32 %v2039_v22, %v442_v12  ;;  %v564_v22 = vmul.f32 %v2111_v2, %v2042_v25  ;;  %995 = vperm.xlu1 %1762, %v977_v38   ;;  %v980_v25 = vld [vmem:[%s2445_s6 + $0x28] sm:$0xff] }
  0x9c   : > { %v2045_v27 = vpop.permute.xlu0 %397  ;;  %1010 = vperm.xlu0 %1761, %v980_v25  }
  0x9d   : > { %v2047_v28 = vpop.permute.xlu1 %392  ;;  %v580_v53 = vadd.f32 %v564_v22, %v498_v35  ;;  %v1172_v22 = vld [vmem:[%s2447_s8 + $0x20] sm:$0xff] }
  0x9e   : > { %v443_v35 = vmul.f32 %v2084_v48, %v2047_v28 }
  0xa0   : > { %v2052_v30 = vpop.permute.xlu0 %467  ;;  %1020 = vperm.xlu0 %1761, %v982_v1  }
  0xa2   : > { %v2057_v31 = vpop.permute.xlu1 %594 }
  0xa3   : > { %v643_v37 = vmul.f32 %v2115_v9, %v2057_v31  ;;  %v644_v40 = vmul.f32 %v2126_v15, %v2057_v31  ;;  %v579_v31 = vadd.f32 %v563_v39, %v497_v34  ;;  %v1170_v34 = vld [vmem:[%s2447_s8 + $0x10] sm:$0xff]  ;;  %v1173_v39 = vld [vmem:[%s2447_s8 + $0x28] sm:$0xff] }
  0xa4   : > { %v2060_v33 = vpop.permute.xlu0 %482  ;;  %1191 = vperm.xlu0 %1761, %v1169_v13   ;;  %v1179_v13 = vld [vmem:[%s2447_s8 + $0x58] sm:$0xff] }
  0xa6   : > { %v2063_v36 = vpop.permute.xlu1 %598 }
  0xa7   : > { %v645_v43 = vmul.f32 %v2115_v9, %v2063_v36  ;;  %v646_v44 = vmul.f32 %v2126_v15, %v2063_v36  ;;  %v979_v36 = vld [vmem:[%s2445_s6 + $0x20] sm:$0xff] }
  0xa8   : > { %v2072_v41 = vpop.permute.xlu0 %417  ;;  %1005 = vperm.xlu1 %1762, %v979_v36   ;;  %v1174_v36 = vld [vmem:[%s2447_s8 + $0x30] sm:$0xff] }
  0xa9   : > { %v661_v55 = vadd.f32 %v645_v43, %v579_v31  ;;  %v662_v56 = vadd.f32 %v646_v44, %v580_v53  ;;  %v445_v44 = vmul.f32 %v2084_v48, %v2045_v27 }
  0xab   : > { %v2081_v46 = vpop.permute.xlu1 %472 }
  0xac   : > { %v2086_v50 = vpop.permute.xlu0 %487 }
  0xb0   : > { %v2102_v61 = vpop.permute.xlu1 %524 }
  0xb1   : > { %v513_v4 = vpop.permute.xlu0 %512  ;;  %v567_v53 = vmul.f32 %v2100_v60, %v2102_v61 }
  0xb2   : > { %v561_v5 = vmul.f32 %v2100_v60, %v513_v4  ;;  %v562_v6 = vmul.f32 %v2111_v2, %v513_v4 }
  0xb4   : > { %v577_v19 = vadd.f32 %v561_v5, %v495_v10  ;;  %v578_v23 = vadd.f32 %v562_v6, %v496_v16  ;;  %v981_v6 = vld [vmem:[%s2445_s6 + $0x30] sm:$0xff] }
  0xb5   : > { %v2129_v17 = vpop.permute.xlu0 %520  ;;  %v677_v18 = vpop.permute.xlu1 %676  ;;  %1015 = vperm.xlu1 %1762, %v981_v6  }
  0xb6   : > { %v659_v45 = vadd.f32 %v643_v37, %v577_v19  ;;  %v725_v49 = vmul.f32 %v2131_v32, %v677_v18  ;;  %v726_v51 = vmul.f32 %v2133_v24, %v677_v18  ;;  %v660_v52 = vadd.f32 %v644_v40, %v578_v23  ;;  %v1168_v18 = vld [vmem:[%s2447_s8] sm:$0xff]  ;;  %v1171_v23 = vld [vmem:[%s2447_s8 + $0x18] sm:$0xff] }
  0xb7   : > { %v444_v37 = vmul.f32 %v2095_v54, %v2047_v28  ;;  %1201 = vperm.xlu0 %1761, %v1171_v23   ;;  %v565_v20 = vmul.f32 %v2100_v60, %v2129_v17  ;;  %v566_v38 = vmul.f32 %v2111_v2, %v2129_v17  ;;  %v499_v28 = vadd.f32 %v2052_v30, %v443_v35 }
  0xb8   : > { %v741_v59 = vadd.f32 %v725_v49, %v659_v45  ;;  %v742_v0 = vadd.f32 %v726_v51, %v660_v52  ;;  %v446_v17 = vmul.f32 %v2095_v54, %v2045_v27  ;;  %v647_v49 = vmul.f32 %v2115_v9, %v2037_v21 }
  0xb9   : > { %v2149_v42 = vpop.permute.xlu0 %536  ;;  %1186 = vperm.xlu1 %1762, %v1168_v18   ;;  %v500_v43 = vadd.f32 %v2052_v30, %v444_v37  ;;  %v648_v51 = vmul.f32 %v2126_v15, %v2037_v21  ;;  %v581_v52 = vadd.f32 %v565_v20, %v499_v28  ;;  %v1175_v30 = vld [vmem:[%s2447_s8 + $0x38] sm:$0xff]  ;;  %v568_v27 = vmul.f32 %v2111_v2, %v2102_v61  ;;  %v1178_v18 = vld [vmem:[%s2447_s8 + $0x50] sm:$0xff] }
  0xba   : > { %v2157_v47 = vpop.permute.xlu1 %402  ;;  %v758_v8 = vmax.f32 %v742_v0, 0.0  ;;  %v757_v11 = vmax.f32 %v741_v59, 0.0  ;;  %v1177_v0 = vld [vmem:[%s2447_s8 + $0x48] sm:$0xff] }
  0xbb   : > { %1211 = vperm.xlu0 %1761, %v1173_v39   ;;  %v582_v31 = vadd.f32 %v566_v38, %v500_v43  ;;  %v573_v38 = vmul.f32 %v2100_v60, %v2149_v42  ;;  %v574_v39 = vmul.f32 %v2111_v2, %v2149_v42  ;;  %v1181_v43 = vld [vmem:[%s2447_s8 + $0x68] sm:$0xff] }
  0xbd   : > { %1196 = vperm.xlu1 %1762, %v1170_v34   ;;  %v664_v61 = vadd.f32 %v648_v51, %v582_v31 }
  0xbe   : > { %v681_v57 = vpop.permute.xlu0 %680  ;;  %v2167_v58 = vpop.permute.xlu1 %407 }
  0xbf   : > { %v727_v62 = vmul.f32 %v2131_v32, %v681_v57  ;;  %v728_v63 = vmul.f32 %v2133_v24, %v681_v57  ;;  %v502_v57 = vadd.f32 %v2081_v46, %v446_v17  ;;  %1221 = vperm.xlu0 %1761, %v1175_v30   ;;  %v1183_v30 = vld [vmem:[%s2447_s8 + $0x78] sm:$0xff] }
  0xc1   : > { %v743_v4 = vadd.f32 %v727_v62, %v661_v55  ;;  %v744_v5 = vadd.f32 %v728_v63, %v662_v56  ;;  %1206 = vperm.xlu1 %1762, %v1172_v22   ;;  %v501_v56 = vadd.f32 %v2081_v46, %v445_v44  ;;  %v663_v63 = vadd.f32 %v647_v49, %v581_v52 }
  0xc2   : > { %v685_v45 = vpop.permute.xlu0 %684 }
  0xc3   : > { %v607_v7 = vpop.permute.xlu1 %606  ;;  %v760_v10 = vmax.f32 %v744_v5, 0.0  ;;  %v759_v12 = vmax.f32 %v743_v4, 0.0  ;;  %v729_v21 = vmul.f32 %v2131_v32, %v685_v45  ;;  %v730_v55 = vmul.f32 %v2133_v24, %v685_v45  ;;  %v1176_v5 = vld [vmem:[%s2447_s8 + $0x40] sm:$0xff]  ;;  %1231 = vperm.xlu0 %1761, %v1177_v0  }
  0xc4   : > { %v649_v59 = vmul.f32 %v2115_v9, %v607_v7  ;;  %v650_v62 = vmul.f32 %v2126_v15, %v607_v7  ;;  %v583_v1 = vadd.f32 %v567_v53, %v501_v56  ;;  %v584_v4 = vadd.f32 %v568_v27, %v502_v57  ;;  %v1180_v45 = vld [vmem:[%s2447_s8 + $0x60] sm:$0xff]  ;;  %v1182_v53 = vld [vmem:[%s2447_s8 + $0x70] sm:$0xff] }
  0xc5   : > { %v782_v14 = vpack.c.bf16 %v760_v10, %v758_v8  ;;  %v781_v16 = vpack.c.bf16 %v759_v12, %v757_v11  ;;  %1216 = vperm.xlu1 %1762, %v1174_v36   ;;  %v745_v6 = vadd.f32 %v729_v21, %v663_v63  ;;  %v746_v46 = vadd.f32 %v730_v55, %v664_v61 }
  0xc6   : > { %v665_v10 = vadd.f32 %v649_v59, %v583_v1  ;;  %v666_v11 = vadd.f32 %v650_v62, %v584_v4  ;;  %v450_v36 = vmul.f32 %v2095_v54, %v2167_v58  ;;  %v447_v61 = vmul.f32 %v2084_v48, %v2157_v47  ;;  %v697_v1 = vpop.permute.xlu0 %696 }
  0xc7   : > { %870 = vmatprep.subr.bf16.mxu1 %v782_v14  ;;  %v761_v23 = vmax.f32 %v745_v6, 0.0  ;;  %v762_v34 = vmax.f32 %v746_v46, 0.0  ;;  %1241 = vperm.xlu0 %1761, %v1179_v13   ;;  %v448_v0 = vmul.f32 %v2095_v54, %v2157_v47 }
  0xc8   : > { %v2183_v19 = vpop.permute.xlu1 %477  ;;  %871 = vmatpush1.bf16.msra.mxu1 %v781_v16  ;;  %v506_v59 = vadd.f32 %v2060_v33, %v450_v36 }
  0xc9   : > { %1226 = vperm.xlu1 %1762, %v1176_v5   ;;  %v503_v6 = vadd.f32 %v2183_v19, %v447_v61  ;;  %v504_v46 = vadd.f32 %v2183_v19, %v448_v0 }
  0xcb   : > { %1251 = vperm.xlu0 %1761, %v1181_v43  }
  0xcd   : > { %v2202_v40 = vpop.permute.xlu1 %528  ;;  %1236 = vperm.xlu1 %1762, %v1178_v18  }
  0xcf   : > { %1261 = vperm.xlu0 %1761, %v1183_v30  }
  0xd1   : > { %v533_v25 = vpop.permute.xlu1 %532  ;;  %1246 = vperm.xlu1 %1762, %v1180_v45  }
  0xd2   : > { %v571_v55 = vmul.f32 %v2100_v60, %v533_v25  ;;  %v572_v56 = vmul.f32 %v2111_v2, %v533_v25  ;;  %v570_v25 = vmul.f32 %v2111_v2, %v2202_v40 }
  0xd4   : > { %v588_v5 = vadd.f32 %v572_v56, %v506_v59 }
  0xd5   : > { %1256 = vperm.xlu1 %1762, %v1182_v53  }
  0xd6   : > { %v689_v8 = vpop.permute.xlu1 %688 }
  0xd7   : > { %v731_v7 = vmul.f32 %v2131_v32, %v689_v8  ;;  %v732_v12 = vmul.f32 %v2133_v24, %v689_v8 }
  0xd9   : > { %v747_v14 = vadd.f32 %v731_v7, %v665_v10  ;;  %v748_v16 = vadd.f32 %v732_v12, %v666_v11  ;;  %v735_v7 = vmul.f32 %v2131_v32, %v697_v1  ;;  %v736_v12 = vmul.f32 %v2133_v24, %v697_v1 }
  0xdb   : > { %v763_v35 = vmax.f32 %v747_v14, 0.0  ;;  %v764_v37 = vmax.f32 %v748_v16, 0.0  ;;  %v413_v20 = vpop.permute.xlu1 %412 }
  0xdc   : > { %v451_v22 = vmul.f32 %v2084_v48, %v413_v20  ;;  %v452_v28 = vmul.f32 %v2095_v54, %v413_v20 }
  0xdd   : > { %v784_v44 = vpack.c.bf16 %v764_v37, %v762_v34  ;;  %v783_v17 = vpack.c.bf16 %v763_v35, %v761_v23 }
  0xde   : > { %v507_v49 = vadd.f32 %v2086_v50, %v451_v22  ;;  %v508_v51 = vadd.f32 %v2086_v50, %v452_v28  ;;  %v449_v50 = vmul.f32 %v2084_v48, %v2167_v58  ;;  %v569_v58 = vmul.f32 %v2100_v60, %v2202_v40 }
  0xdf   : > { %872 = vmatprep.subr.bf16.mxu1 %v784_v44  ;;  %v586_v40 = vadd.f32 %v570_v25, %v504_v46  ;;  %v1766_v46 = vld [vmem:[%s2442_s3 + $0x18] sm:$0xff]  }
  0xe0   : > { %v611_v42 = vpop.permute.xlu1 %610  ;;  %873 = vmatpush1.bf16.msra.mxu1 %v783_v17  ;;  %v589_v52 = vadd.f32 %v573_v38, %v507_v49  ;;  %v590_v31 = vadd.f32 %v574_v39, %v508_v51  ;;  %v505_v57 = vadd.f32 %v2060_v33, %v449_v50  ;;  %v585_v13 = vadd.f32 %v569_v58, %v503_v6  ;;  %v1763_v6 = vld [vmem:[%s2442_s3] sm:$0xff]  }
  0xe1   : > { %v651_v8 = vmul.f32 %v2115_v9, %v611_v42  ;;  %v652_v10 = vmul.f32 %v2126_v15, %v611_v42  ;;  %v453_v51 = vmul.f32 %v2084_v48, %v2072_v41  ;;  %v454_v42 = vmul.f32 %v2095_v54, %v2072_v41 }
  0xe2   : > { %v587_v4 = vadd.f32 %v571_v55, %v505_v57 }
  0xe3   : > { %v667_v14 = vadd.f32 %v651_v8, %v585_v13  ;;  %v668_v16 = vadd.f32 %v652_v10, %v586_v40 }
  0xe4   : > { %v615_v27 = vpop.permute.xlu1 %614 }
  0xe5   : > { %v653_v62 = vmul.f32 %v2115_v9, %v615_v27  ;;  %v654_v63 = vmul.f32 %v2126_v15, %v615_v27  ;;  %v701_v27 = vpop.permute.xlu0 %700 }
  0xe6   : > { %v737_v48 = vmul.f32 %v2131_v32, %v701_v27  ;;  %v738_v41 = vmul.f32 %v2133_v24, %v701_v27 }
  0xe7   : > { %v669_v11 = vadd.f32 %v653_v62, %v587_v4  ;;  %v670_v47 = vadd.f32 %v654_v63, %v588_v5 }
  0xe9   : > { %v493_v21 = vpop.permute.xlu1 %492  ;;  %v751_v23 = vadd.f32 %v735_v7, %v669_v11  ;;  %v752_v34 = vadd.f32 %v736_v12, %v670_v47  ;;  %v800_v8 = vpop.permute.xlu0 %799 }
  0xea   : > { %v509_v56 = vadd.f32 %v493_v21, %v453_v51  ;;  %v510_v57 = vadd.f32 %v493_v21, %v454_v42 }
  0xeb   : > { %v767_v38 = vmax.f32 %v751_v23, 0.0  ;;  %v768_v39 = vmax.f32 %v752_v34, 0.0 }
  0xee   : > { %v541_v33 = vpop.permute.xlu1 %540 }
  0xef   : > { %v575_v30 = vmul.f32 %v2100_v60, %v541_v33  ;;  %v576_v53 = vmul.f32 %v2111_v2, %v541_v33 }
  0xf1   : > { %v591_v54 = vadd.f32 %v575_v30, %v509_v56  ;;  %v592_v60 = vadd.f32 %v576_v53, %v510_v57 }
  0xf3   : > { %v693_v18 = vpop.permute.xlu1 %692 }
  0xf4   : > { %v733_v35 = vmul.f32 %v2131_v32, %v693_v18  ;;  %v734_v19 = vmul.f32 %v2133_v24, %v693_v18 }
  0xf6   : > { %v749_v37 = vadd.f32 %v733_v35, %v667_v14  ;;  %v750_v20 = vadd.f32 %v734_v19, %v668_v16 }
  0xf8   : > { %v765_v22 = vmax.f32 %v749_v37, 0.0  ;;  %v766_v28 = vmax.f32 %v750_v20, 0.0  ;;  %v619_v43 = vpop.permute.xlu1 %618 }
  0xf9   : > { %v655_v44 = vmul.f32 %v2115_v9, %v619_v43  ;;  %v656_v17 = vmul.f32 %v2126_v15, %v619_v43 }
  0xfa   : > { %v786_v45 = vpack.c.bf16 %v768_v39, %v766_v28  ;;  %v785_v49 = vpack.c.bf16 %v767_v38, %v765_v22  ;;  %v815_v28 = vpop.permute.xlu0 %814 }
  0xfb   : > { %v671_v36 = vadd.f32 %v655_v44, %v589_v52  ;;  %v672_v55 = vadd.f32 %v656_v17, %v590_v31 }
  0xfc   : > { %v623_v50 = vpop.permute.xlu1 %622  ;;  %874 = vmatprep.subr.bf16.mxu1 %v786_v45 }
  0xfd   : > { %875 = vmatpush1.bf16.msra.mxu1 %v785_v49  ;;  %v657_v59 = vmul.f32 %v2115_v9, %v623_v50  ;;  %v658_v62 = vmul.f32 %v2126_v15, %v623_v50  ;;  %v753_v63 = vadd.f32 %v737_v48, %v671_v36  ;;  %v754_v2 = vadd.f32 %v738_v41, %v672_v55 }
  0xff   : > { %v673_v0 = vadd.f32 %v657_v59, %v591_v54  ;;  %v674_v58 = vadd.f32 %v658_v62, %v592_v60  ;;  %v770_v15 = vmax.f32 %v754_v2, 0.0  ;;  %v769_v4 = vmax.f32 %v753_v63, 0.0  ;;  %v825_v59 = vpop.permute.xlu0 %824 }
 0x101   : > { %v705_v61 = vpop.permute.xlu1 %704 }
 0x102   : > { %v739_v52 = vmul.f32 %v2131_v32, %v705_v61  ;;  %v740_v31 = vmul.f32 %v2133_v24, %v705_v61  ;;  %v1764_v32 = vld [vmem:[%s2442_s3 + $0x8] sm:$0xff]   ;;  %v1765_v24 = vld [vmem:[%s2442_s3 + $0x10] sm:$0xff]  }
 0x104   : > { %v755_v21 = vadd.f32 %v739_v52, %v673_v0  ;;  %v756_v25 = vadd.f32 %v740_v31, %v674_v58 }
 0x106   : > { %v771_v9 = vmax.f32 %v755_v21, 0.0  ;;  %v772_v1 = vmax.f32 %v756_v25, 0.0  ;;  %v805_v7 = vpop.permute.xlu1 %804 }
 0x108   : > { %v788_v5 = vpack.c.bf16 %v772_v1, %v770_v15  ;;  %v787_v33 = vpack.c.bf16 %v771_v9, %v769_v4  ;;  %v835_v1 = vpop.permute.xlu0 %834 }
 0x10a   : > { %876 = vmatprep.subr.bf16.mxu1 %v788_v5  ;;  %v810_v37 = vpop.permute.xlu1 %809 }
 0x10b   : > { %877 = vmatpush1.bf16.msra.mxu1 %v787_v33 }
 0x10e   : > { %1643 = vmatmul.mubr.msk.bf16.vlgmr.msra.gmra.mrb[0].mxu1 %vm857_vm0, %v1763_v6  ;;  %v820_v50 = vpop.permute.xlu1 %819 }
 0x10f   : > { %912 = vmatprep.mubr.bf16.mxu1 %v1860_v3 }
 0x112   : > { %v830_v52 = vpop.permute.xlu1 %829 }
 0x116   : > { %1644 = vmatmul.mubr.msk.bf16.gmra.mrb[4].mxu1 %vm857_vm0, %v1764_v32 }
 0x117   : > { %922 = vmatprep.mubr.bf16.mxu1 %v1860_v3 }
 0x11e   : > { %1645 = vmatmul.mubr.msk.bf16.gmra.mrb[8].mxu1 %vm857_vm0, %v1765_v24 }
 0x11f   : > { %932 = vmatprep.mubr.bf16.mxu1 %v1860_v3 }
 0x126   : > { %1646 = vmatmul.mubr.msk.bf16.gmra.mrb[12].mxu1 %vm857_vm0, %v1766_v46 }
 0x127   : > { %1087 = vmatprep.mubr.bf16.mxu1 %v1860_v3 }
 0x1e1   : > { %v904_v10 = vpop.f32.mrb[0].mxu1 }
 0x1e2   : > { %v905_v11 = vadd.f32 %v904_v10, %v800_v8  ;;  %v906_v47 = vpop.f32.mrb[1].mxu1 }
 0x1e3   : > { %v907_v12 = vadd.f32 %v906_v47, %v800_v8  ;;  %v908_v13 = vpop.f32.mrb[2].mxu1  ;;  %v1767_v47 = vld [vmem:[%s2444_s5] sm:$0xff]  }
 0x1e4   : > { %v909_v40 = vadd.f32 %v908_v13, %v805_v7  ;;  %v910_v14 = vpop.f32.mrb[3].mxu1  ;;  %v943_v18 = vmax.f32 %v905_v11, 0.0  ;;  %v1770_v13 = vld [vmem:[%s2444_s5 + $0x18] sm:$0xff]  }
 0x1e5   : > { %v911_v16 = vadd.f32 %v910_v14, %v805_v7  ;;  %v944_v34 = vmax.f32 %v907_v12, 0.0  ;;  %v1768_v7 = vld [vmem:[%s2444_s5 + $0x8] sm:$0xff]   ;;  %v1769_v12 = vld [vmem:[%s2444_s5 + $0x10] sm:$0xff]  }
 0x1e6   : > { %v945_v23 = vmax.f32 %v909_v40, 0.0  ;;  %v986_v40 = vpop.permute.xlu1 %985 }
 0x1e7   : > { %v946_v35 = vmax.f32 %v911_v16, 0.0 }
 0x1e8   : > { %v967_v19 = vpack.c.bf16 %v945_v23, %v943_v18  ;;  %v991_v23 = vpop.permute.xlu0 %990 }
 0x1e9   : > { %v968_v20 = vpack.c.bf16 %v946_v35, %v944_v34  ;;  %v914_v38 = vpop.f32.mrb[4].mxu1 }
 0x1ea   : > { %v915_v39 = vadd.f32 %v914_v38, %v810_v37  ;;  %v916_v22 = vpop.f32.mrb[5].mxu1 }
 0x1eb   : > { %v917_v43 = vadd.f32 %v916_v22, %v810_v37  ;;  %v918_v44 = vpop.f32.mrb[6].mxu1  ;;  %1055 = vmatprep.subr.bf16.mxu1 %v968_v20 }
 0x1ec   : > { %v919_v17 = vadd.f32 %v918_v44, %v815_v28  ;;  %v920_v45 = vpop.f32.mrb[7].mxu1  ;;  %1056 = vmatpush1.bf16.msra.mxu1 %v967_v19  ;;  %v947_v51 = vmax.f32 %v915_v39, 0.0  ;;  %v996_v44 = vpop.permute.xlu1 %995 }
 0x1ed   : > { %v921_v49 = vadd.f32 %v920_v45, %v815_v28  ;;  %v948_v30 = vmax.f32 %v917_v43, 0.0 }
 0x1ee   : > { %v949_v42 = vmax.f32 %v919_v17, 0.0 }
 0x1ef   : > { %v950_v53 = vmax.f32 %v921_v49, 0.0 }
 0x1f0   : > { %v969_v27 = vpack.c.bf16 %v949_v42, %v947_v51  ;;  %v1001_v42 = vpop.permute.xlu0 %1000 }
 0x1f1   : > { %v970_v36 = vpack.c.bf16 %v950_v53, %v948_v30  ;;  %v924_v55 = vpop.f32.mrb[8].mxu1 }
 0x1f2   : > { %v925_v56 = vadd.f32 %v924_v55, %v820_v50  ;;  %v926_v57 = vpop.f32.mrb[9].mxu1 }
 0x1f3   : > { %v927_v62 = vadd.f32 %v926_v57, %v820_v50  ;;  %v928_v48 = vpop.f32.mrb[10].mxu1  ;;  %1057 = vmatprep.subr.bf16.mxu1 %v970_v36 }
 0x1f4   : > { %v929_v41 = vadd.f32 %v928_v48, %v825_v59  ;;  %v930_v54 = vpop.f32.mrb[11].mxu1  ;;  %1058 = vmatpush1.bf16.msra.mxu1 %v969_v27  ;;  %v951_v63 = vmax.f32 %v925_v56, 0.0  ;;  %v1006_v48 = vpop.permute.xlu1 %1005 }
 0x1f5   : > { %v931_v60 = vadd.f32 %v930_v54, %v825_v59  ;;  %v952_v61 = vmax.f32 %v927_v62, 0.0 }
 0x1f6   : > { %v953_v2 = vmax.f32 %v929_v41, 0.0 }
 0x1f7   : > { %v954_v0 = vmax.f32 %v931_v60, 0.0 }
 0x1f8   : > { %v971_v58 = vpack.c.bf16 %v953_v2, %v951_v63  ;;  %v1011_v2 = vpop.permute.xlu0 %1010 }
 0x1f9   : > { %v972_v31 = vpack.c.bf16 %v954_v0, %v952_v61  ;;  %v934_v21 = vpop.f32.mrb[12].mxu1 }
 0x1fa   : > { %v935_v25 = vadd.f32 %v934_v21, %v830_v52  ;;  %v936_v9 = vpop.f32.mrb[13].mxu1 }
 0x1fb   : > { %v937_v15 = vadd.f32 %v936_v9, %v830_v52  ;;  %v938_v4 = vpop.f32.mrb[14].mxu1  ;;  %1059 = vmatprep.subr.bf16.mxu1 %v972_v31 }
 0x1fc   : > { %v939_v5 = vadd.f32 %v938_v4, %v835_v1  ;;  %v940_v33 = vpop.f32.mrb[15].mxu1  ;;  %1060 = vmatpush1.bf16.msra.mxu1 %v971_v58  ;;  %v955_v32 = vmax.f32 %v935_v25, 0.0  ;;  %v1016_v4 = vpop.permute.xlu1 %1015 }
 0x1fd   : > { %v941_v6 = vadd.f32 %v940_v33, %v835_v1  ;;  %v956_v46 = vmax.f32 %v937_v15, 0.0 }
 0x1fe   : > { %v957_v24 = vmax.f32 %v939_v5, 0.0 }
 0x1ff   : > { %v958_v8 = vmax.f32 %v941_v6, 0.0 }
 0x200   : > { %v973_v10 = vpack.c.bf16 %v957_v24, %v955_v32  ;;  %v1021_v24 = vpop.permute.xlu0 %1020 }
 0x201   : > { %v974_v11 = vpack.c.bf16 %v958_v8, %v956_v46 }
 0x203   : > { %1061 = vmatprep.subr.bf16.mxu1 %v974_v11 }
 0x204   : > { %1062 = vmatpush1.bf16.msra.mxu1 %v973_v10 }
 0x207   : > { %1651 = vmatmul.mubr.msk.bf16.vlgmr.msra.gmra.mrb[16].mxu1 %vm857_vm0, %v1767_v47 }
 0x208   : > { %1097 = vmatprep.mubr.bf16.mxu1 %v1860_v3 }
 0x20f   : > { %1652 = vmatmul.mubr.msk.bf16.gmra.mrb[20].mxu1 %vm857_vm0, %v1768_v7 }
 0x210   : > { %1107 = vmatprep.mubr.bf16.mxu1 %v1860_v3 }
 0x217   : > { %1653 = vmatmul.mubr.msk.bf16.gmra.mrb[24].mxu1 %vm857_vm0, %v1769_v12 }
 0x218   : > { %1117 = vmatprep.mubr.bf16.mxu1 %v1860_v3 }
 0x21f   : > { %1654 = vmatmul.mubr.msk.bf16.gmra.mrb[28].mxu1 %vm857_vm0, %v1770_v13 }
 0x2da   : > { %v1089_v14 = vpop.f32.mrb[16].mxu1 }
 0x2db   : > { %v1090_v16 = vadd.f32 %v1089_v14, %v986_v40  ;;  %v1091_v18 = vpop.f32.mrb[17].mxu1 }
 0x2dc   : > { %v1092_v34 = vadd.f32 %v1091_v18, %v986_v40  ;;  %v1093_v35 = vpop.f32.mrb[18].mxu1  ;;  %v1771_v18 = vld [vmem:[%s2446_s7] sm:$0xff]  }
 0x2dd   : > { %v1094_v19 = vadd.f32 %v1093_v35, %v991_v23  ;;  %v1095_v37 = vpop.f32.mrb[19].mxu1  ;;  %v1128_v38 = vmax.f32 %v1090_v16, 0.0  ;;  %v1774_v35 = vld [vmem:[%s2446_s7 + $0x18] sm:$0xff]  }
 0x2de   : > { %v1096_v20 = vadd.f32 %v1095_v37, %v991_v23  ;;  %v1129_v22 = vmax.f32 %v1092_v34, 0.0  ;;  %v1772_v23 = vld [vmem:[%s2446_s7 + $0x8] sm:$0xff]   ;;  %v1773_v34 = vld [vmem:[%s2446_s7 + $0x10] sm:$0xff]  }
 0x2df   : > { %v1130_v39 = vmax.f32 %v1094_v19, 0.0  ;;  %v1775_v19 = vld [vmem:[%s2446_s7 + $0x20] sm:$0xff]   ;;  %v1776_v37 = vld [vmem:[%s2446_s7 + $0x28] sm:$0xff]  }
 0x2e0   : > { %v1131_v28 = vmax.f32 %v1096_v20, 0.0  ;;  %v1777_v20 = vld [vmem:[%s2446_s7 + $0x30] sm:$0xff]  }
 0x2e1   : > { %v1160_v43 = vpack.c.bf16 %v1130_v39, %v1128_v38  ;;  %v1778_v38 = vld [vmem:[%s2446_s7 + $0x38] sm:$0xff]  }
 0x2e2   : > { %v1099_v17 = vpop.f32.mrb[20].mxu1  ;;  %v1161_v45 = vpack.c.bf16 %v1131_v28, %v1129_v22  ;;  %v1187_v28 = vpop.permute.xlu1 %1186 }
 0x2e3   : > { %v1100_v49 = vadd.f32 %v1099_v17, %v996_v44  ;;  %v1101_v51 = vpop.f32.mrb[21].mxu1  ;;  %v1192_v17 = vpop.permute.xlu0 %1191 }
 0x2e4   : > { %v1102_v30 = vadd.f32 %v1101_v51, %v996_v44  ;;  %v1103_v53 = vpop.f32.mrb[22].mxu1  ;;  %1328 = vmatprep.subr.bf16.mxu0 %v1161_v45 }
 0x2e5   : > { %v1104_v27 = vadd.f32 %v1103_v53, %v1001_v42  ;;  %v1105_v50 = vpop.f32.mrb[23].mxu1  ;;  %1329 = vmatpush1.bf16.msra.mxu0 %v1160_v43  ;;  %v1132_v55 = vmax.f32 %v1100_v49, 0.0 }
 0x2e6   : > { %v1106_v36 = vadd.f32 %v1105_v50, %v1001_v42  ;;  %v1133_v57 = vmax.f32 %v1102_v30, 0.0  ;;  %v1197_v49 = vpop.permute.xlu1 %1196 }
 0x2e7   : > { %v1134_v56 = vmax.f32 %v1104_v27, 0.0 }
 0x2e8   : > { %v1135_v59 = vmax.f32 %v1106_v36, 0.0 }
 0x2e9   : > { %v1162_v62 = vpack.c.bf16 %v1134_v56, %v1132_v55 }
 0x2ea   : > { %v1163_v41 = vpack.c.bf16 %v1135_v59, %v1133_v57  ;;  %v1109_v54 = vpop.f32.mrb[24].mxu1 }
 0x2eb   : > { %v1110_v60 = vadd.f32 %v1109_v54, %v1006_v48  ;;  %v1111_v63 = vpop.f32.mrb[25].mxu1 }
 0x2ec   : > { %v1112_v61 = vadd.f32 %v1111_v63, %v1006_v48  ;;  %v1113_v0 = vpop.f32.mrb[26].mxu1  ;;  %1330 = vmatprep.subr.bf16.mxu0 %v1163_v41 }
 0x2ed   : > { %v1114_v58 = vadd.f32 %v1113_v0, %v1011_v2  ;;  %v1115_v52 = vpop.f32.mrb[27].mxu1  ;;  %1331 = vmatpush1.bf16.msra.mxu0 %v1162_v62  ;;  %v1136_v21 = vmax.f32 %v1110_v60, 0.0 }
 0x2ee   : > { %v1116_v31 = vadd.f32 %v1115_v52, %v1011_v2  ;;  %v1137_v9 = vmax.f32 %v1112_v61, 0.0 }
 0x2ef   : > { %v1138_v25 = vmax.f32 %v1114_v58, 0.0 }
 0x2f0   : > { %v1139_v1 = vmax.f32 %v1116_v31, 0.0  ;;  %v1207_v31 = vpop.permute.xlu1 %1206 }
 0x2f1   : > { %v1164_v15 = vpack.c.bf16 %v1138_v25, %v1136_v21 }
 0x2f2   : > { %v1165_v5 = vpack.c.bf16 %v1139_v1, %v1137_v9  ;;  %v1119_v33 = vpop.f32.mrb[28].mxu1 }
 0x2f3   : > { %v1120_v6 = vadd.f32 %v1119_v33, %v1016_v4  ;;  %v1121_v32 = vpop.f32.mrb[29].mxu1 }
 0x2f4   : > { %v1122_v46 = vadd.f32 %v1121_v32, %v1016_v4  ;;  %v1123_v8 = vpop.f32.mrb[30].mxu1  ;;  %1332 = vmatprep.subr.bf16.mxu0 %v1165_v5 }
 0x2f5   : > { %v1124_v10 = vadd.f32 %v1123_v8, %v1021_v24  ;;  %v1125_v11 = vpop.f32.mrb[31].mxu1  ;;  %1333 = vmatpush1.bf16.msra.mxu0 %v1164_v15  ;;  %v1140_v7 = vmax.f32 %v1120_v6, 0.0 }
 0x2f6   : > { %v1126_v47 = vadd.f32 %v1125_v11, %v1021_v24  ;;  %v1141_v13 = vmax.f32 %v1122_v46, 0.0 }
 0x2f7   : > { %v1142_v12 = vmax.f32 %v1124_v10, 0.0 }
 0x2f8   : > { %v1143_v40 = vmax.f32 %v1126_v47, 0.0 }
 0x2f9   : > { %v1166_v14 = vpack.c.bf16 %v1142_v12, %v1140_v7  ;;  %v1217_v12 = vpop.permute.xlu1 %1216 }
 0x2fa   : > { %v1167_v16 = vpack.c.bf16 %v1143_v40, %v1141_v13 }
 0x2fc   : > { %1334 = vmatprep.subr.bf16.mxu0 %v1167_v16 }
 0x2fd   : > { %1335 = vmatpush1.bf16.msra.mxu0 %v1166_v14 }
 0x300   : > { %1663 = vmatmul.mubr.msk.bf16.vlgmr.msra.gmra.mrb[0].mxu0 %vm857_vm0, %v1771_v18 }
 0x301   : > { %1370 = vmatprep.mubr.bf16.mxu0 %v1860_v3 }
 0x308   : > { %1664 = vmatmul.mubr.msk.bf16.gmra.mrb[4].mxu0 %vm857_vm0, %v1772_v23 }
 0x309   : > { %1380 = vmatprep.mubr.bf16.mxu0 %v1860_v3 }
 0x310   : > { %1665 = vmatmul.mubr.msk.bf16.gmra.mrb[8].mxu0 %vm857_vm0, %v1773_v34 }
 0x311   : > { %1390 = vmatprep.mubr.bf16.mxu0 %v1860_v3 }
 0x318   : > { %1666 = vmatmul.mubr.msk.bf16.gmra.mrb[12].mxu0 %vm857_vm0, %v1774_v35 }
 0x319   : > { %1400 = vmatprep.mubr.bf16.mxu0 %v1860_v3 }
 0x320   : > { %1667 = vmatmul.mubr.msk.bf16.gmra.mrb[16].mxu0 %vm857_vm0, %v1775_v19 }
 0x321   : > { %1410 = vmatprep.mubr.bf16.mxu0 %v1860_v3 }
 0x328   : > { %1668 = vmatmul.mubr.msk.bf16.gmra.mrb[20].mxu0 %vm857_vm0, %v1776_v37 }
 0x329   : > { %1420 = vmatprep.mubr.bf16.mxu0 %v1860_v3 }
 0x330   : > { %1669 = vmatmul.mubr.msk.bf16.gmra.mrb[24].mxu0 %vm857_vm0, %v1777_v20 }
 0x331   : > { %1430 = vmatprep.mubr.bf16.mxu0 %v1860_v3  ;;  %v1202_v3 = vpop.permute.xlu0 %1201 }
 0x335   : > { %v1212_v15 = vpop.permute.xlu0 %1211 }
 0x338   : > { %1670 = vmatmul.mubr.msk.bf16.gmra.mrb[28].mxu0 %vm857_vm0, %v1778_v38 }
 0x339   : > { %v1222_v18 = vpop.permute.xlu0 %1221 }
 0x3d3   : > { %v1362_v39 = vpop.f32.mrb[0].mxu0 }
 0x3d4   : > { %v1364_v22 = vpop.f32.mrb[1].mxu0  ;;  %v1363_v45 = vadd.f32 %v1362_v39, %v1187_v28 }
 0x3d5   : > { %v1366_v43 = vpop.f32.mrb[2].mxu0  ;;  %v1365_v51 = vadd.f32 %v1364_v22, %v1187_v28 }
 0x3d6   : > { %v1368_v44 = vpop.f32.mrb[3].mxu0  ;;  %v1367_v30 = vadd.f32 %v1366_v43, %v1192_v17  ;;  %v1441_v56 = vmax.f32 %v1363_v45, 0.0 }
 0x3d7   : > { %v1369_v50 = vadd.f32 %v1368_v44, %v1192_v17  ;;  %v1442_v48 = vmax.f32 %v1365_v51, 0.0  ;;  %v1227_v17 = vpop.permute.xlu1 %1226 }
 0x3d8   : > { %v1443_v60 = vmax.f32 %v1367_v30, 0.0  ;;  %v1232_v30 = vpop.permute.xlu0 %1231 }
 0x3d9   : > { %v1444_v61 = vmax.f32 %v1369_v50, 0.0 }
 0x3db   : > { %v1372_v42 = vpop.f32.mrb[4].mxu0 }
 0x3dc   : > { %v1373_v53 = vadd.f32 %v1372_v42, %v1197_v49  ;;  %v1374_v27 = vpop.f32.mrb[5].mxu0 }
 0x3dd   : > { %v1375_v36 = vadd.f32 %v1374_v27, %v1197_v49  ;;  %v1376_v55 = vpop.f32.mrb[6].mxu0 }
 0x3de   : > { %v1445_v57 = vmax.f32 %v1373_v53, 0.0  ;;  %v1377_v59 = vadd.f32 %v1376_v55, %v1202_v3  ;;  %v1378_v62 = vpop.f32.mrb[7].mxu0 }
 0x3df   : > { %v1446_v41 = vmax.f32 %v1375_v36, 0.0  ;;  %v1379_v54 = vadd.f32 %v1378_v62, %v1202_v3 }
 0x3e0   : > { %v1473_v63 = vmax.f32 %v1441_v56, %v1445_v57  ;;  %v1447_v2 = vmax.f32 %v1377_v59, 0.0 }
 0x3e1   : > { %v1494_v0 = vmax.f32 %v1442_v48, %v1446_v41  ;;  %v1448_v58 = vmax.f32 %v1379_v54, 0.0  ;;  %v1237_v54 = vpop.permute.xlu1 %1236 }
 0x3e2   : > { %v1474_v52 = vmax.f32 %v1443_v60, %v1447_v2 }
 0x3e3   : > { %v1495_v21 = vmax.f32 %v1444_v61, %v1448_v58  ;;  %v1382_v25 = vpop.f32.mrb[8].mxu0 }
 0x3e4   : > { %v1383_v9 = vadd.f32 %v1382_v25, %v1207_v31  ;;  %v1384_v1 = vpop.f32.mrb[9].mxu0 }
 0x3e5   : > { %v1385_v4 = vadd.f32 %v1384_v1, %v1207_v31  ;;  %v1386_v5 = vpop.f32.mrb[10].mxu0 }
 0x3e6   : > { %v1449_v33 = vmax.f32 %v1383_v9, 0.0  ;;  %v1387_v6 = vadd.f32 %v1386_v5, %v1212_v15  ;;  %v1388_v32 = vpop.f32.mrb[11].mxu0 }
 0x3e7   : > { %v1450_v24 = vmax.f32 %v1385_v4, 0.0  ;;  %v1389_v46 = vadd.f32 %v1388_v32, %v1212_v15  ;;  %v1247_v32 = vpop.permute.xlu1 %1246 }
 0x3e8   : > { %v1475_v8 = vmax.f32 %v1473_v63, %v1449_v33  ;;  %v1451_v10 = vmax.f32 %v1387_v6, 0.0 }
 0x3e9   : > { %v1496_v11 = vmax.f32 %v1494_v0, %v1450_v24  ;;  %v1452_v47 = vmax.f32 %v1389_v46, 0.0  ;;  %v1242_v0 = vpop.permute.xlu0 %1241 }
 0x3ea   : > { %v1476_v7 = vmax.f32 %v1474_v52, %v1451_v10 }
 0x3eb   : > { %v1497_v13 = vmax.f32 %v1495_v21, %v1452_v47  ;;  %v1392_v40 = vpop.f32.mrb[12].mxu0 }
 0x3ec   : > { %v1393_v14 = vadd.f32 %v1392_v40, %v1217_v12  ;;  %v1394_v16 = vpop.f32.mrb[13].mxu0 }
 0x3ed   : > { %v1395_v23 = vadd.f32 %v1394_v16, %v1217_v12  ;;  %v1396_v34 = vpop.f32.mrb[14].mxu0 }
 0x3ee   : > { %v1453_v35 = vmax.f32 %v1393_v14, 0.0  ;;  %v1397_v19 = vadd.f32 %v1396_v34, %v1222_v18  ;;  %v1398_v37 = vpop.f32.mrb[15].mxu0 }
 0x3ef   : > { %v1454_v20 = vmax.f32 %v1395_v23, 0.0  ;;  %v1399_v38 = vadd.f32 %v1398_v37, %v1222_v18  ;;  %v1257_v37 = vpop.permute.xlu1 %1256 }
 0x3f0   : > { %v1477_v39 = vmax.f32 %v1475_v8, %v1453_v35  ;;  %v1455_v22 = vmax.f32 %v1397_v19, 0.0 }
 0x3f1   : > { %v1498_v28 = vmax.f32 %v1496_v11, %v1454_v20  ;;  %v1456_v43 = vmax.f32 %v1399_v38, 0.0  ;;  %v1252_v11 = vpop.permute.xlu0 %1251 }
 0x3f2   : > { %v1478_v44 = vmax.f32 %v1476_v7, %v1455_v22 }
 0x3f3   : > { %v1499_v45 = vmax.f32 %v1497_v13, %v1456_v43  ;;  %v1402_v49 = vpop.f32.mrb[16].mxu0 }
 0x3f4   : > { %v1403_v51 = vadd.f32 %v1402_v49, %v1227_v17  ;;  %v1404_v42 = vpop.f32.mrb[17].mxu0 }
 0x3f5   : > { %v1405_v53 = vadd.f32 %v1404_v42, %v1227_v17  ;;  %v1406_v27 = vpop.f32.mrb[18].mxu0 }
 0x3f6   : > { %v1457_v3 = vmax.f32 %v1403_v51, 0.0  ;;  %v1407_v50 = vadd.f32 %v1406_v27, %v1232_v30  ;;  %v1408_v36 = vpop.f32.mrb[19].mxu0 }
 0x3f7   : > { %v1458_v55 = vmax.f32 %v1405_v53, 0.0  ;;  %v1409_v56 = vadd.f32 %v1408_v36, %v1232_v30 }
 0x3f8   : > { %v1479_v57 = vmax.f32 %v1477_v39, %v1457_v3  ;;  %v1459_v59 = vmax.f32 %v1407_v50, 0.0 }
 0x3f9   : > { %v1500_v62 = vmax.f32 %v1498_v28, %v1458_v55  ;;  %v1460_v48 = vmax.f32 %v1409_v56, 0.0  ;;  %v1262_v28 = vpop.permute.xlu0 %1261 }
 0x3fa   : > { %v1480_v41 = vmax.f32 %v1478_v44, %v1459_v59 }
 0x3fb   : > { %v1501_v60 = vmax.f32 %v1499_v45, %v1460_v48  ;;  %v1412_v63 = vpop.f32.mrb[20].mxu0 }
 0x3fc   : > { %v1413_v2 = vadd.f32 %v1412_v63, %v1237_v54  ;;  %v1414_v61 = vpop.f32.mrb[21].mxu0 }
 0x3fd   : > { %v1415_v58 = vadd.f32 %v1414_v61, %v1237_v54  ;;  %v1416_v52 = vpop.f32.mrb[22].mxu0 }
 0x3fe   : > { %v1461_v31 = vmax.f32 %v1413_v2, 0.0  ;;  %v1417_v21 = vadd.f32 %v1416_v52, %v1242_v0  ;;  %v1418_v25 = vpop.f32.mrb[23].mxu0 }
 0x3ff   : > { %v1462_v9 = vmax.f32 %v1415_v58, 0.0  ;;  %v1419_v1 = vadd.f32 %v1418_v25, %v1242_v0 }
 0x400   : > { %v1481_v15 = vmax.f32 %v1479_v57, %v1461_v31  ;;  %v1463_v4 = vmax.f32 %v1417_v21, 0.0 }
 0x401   : > { %v1502_v5 = vmax.f32 %v1500_v62, %v1462_v9  ;;  %v1464_v33 = vmax.f32 %v1419_v1, 0.0 }
 0x402   : > { %v1482_v6 = vmax.f32 %v1480_v41, %v1463_v4  ;;  %v1863_v41 = vmov 1966171168  }
 0x403   : > { %v1503_v24 = vmax.f32 %v1501_v60, %v1464_v33  ;;  %v1422_v46 = vpop.f32.mrb[24].mxu0  ;;  %v1519_v54 = vunpack.c.l.s4 %v1863_v41 }
 0x404   : > { %v1423_v8 = vadd.f32 %v1422_v46, %v1247_v32  ;;  %v1424_v10 = vpop.f32.mrb[25].mxu0 }
 0x405   : > { %v1425_v47 = vadd.f32 %v1424_v10, %v1247_v32  ;;  %v1426_v7 = vpop.f32.mrb[26].mxu0  ;;  %v1520_v0 = vunpack.c.0.s8 %v1519_v54 }
 0x406   : > { %v1465_v12 = vmax.f32 %v1423_v8, 0.0  ;;  %v1427_v13 = vadd.f32 %v1426_v7, %v1252_v11  ;;  %v1428_v40 = vpop.f32.mrb[27].mxu0 }
 0x407   : > { %v1466_v14 = vmax.f32 %v1425_v47, 0.0  ;;  %v1429_v16 = vadd.f32 %v1428_v40, %v1252_v11  ;;  %v1523_v25 = vsub.s32 %v1520_v0, %v2050_v29 }
 0x408   : > { %v1483_v18 = vmax.f32 %v1481_v15, %v1465_v12  ;;  %v1467_v23 = vmax.f32 %v1427_v13, 0.0 }
 0x409   : > { %v1504_v34 = vmax.f32 %v1502_v5, %v1466_v14  ;;  %v1468_v35 = vmax.f32 %v1429_v16, 0.0 }
 0x40a   : > { %v1484_v19 = vmax.f32 %v1482_v6, %v1467_v23 }
 0x40b   : > { %v1505_v20 = vmax.f32 %v1503_v24, %v1468_v35  ;;  %v1432_v38 = vpop.f32.mrb[28].mxu0 }
 0x40c   : > { %v1433_v39 = vadd.f32 %v1432_v38, %v1257_v37  ;;  %v1434_v22 = vpop.f32.mrb[29].mxu0 }
 0x40d   : > { %v1435_v43 = vadd.f32 %v1434_v22, %v1257_v37  ;;  %v1436_v44 = vpop.f32.mrb[30].mxu0 }
 0x40e   : > { %v1469_v17 = vmax.f32 %v1433_v39, 0.0  ;;  %v1437_v45 = vadd.f32 %v1436_v44, %v1262_v28  ;;  %v1438_v49 = vpop.f32.mrb[31].mxu0 }
 0x40f   : > { %v1470_v51 = vmax.f32 %v1435_v43, 0.0  ;;  %v1439_v42 = vadd.f32 %v1438_v49, %v1262_v28 }
 0x410   : > { %v1485_v30 = vmax.f32 %v1483_v18, %v1469_v17  ;;  %v1471_v53 = vmax.f32 %v1437_v45, 0.0 }
 0x411   : > { %v1506_v27 = vmax.f32 %v1504_v34, %v1470_v51  ;;  %v1472_v3 = vmax.f32 %v1439_v42, 0.0 }
 0x412   : > { %v1486_v50 = vmax.f32 %v1484_v19, %v1471_v53 }
 0x413   : > { %v1507_v36 = vmax.f32 %v1505_v20, %v1472_v3 }
 0x414   : > { %v1487_v55 = vmax.f32 %v1485_v30, %v1486_v50 }
 0x415   : > { %v1508_v56 = vmax.f32 %v1506_v27, %v1507_v36 }
 0x416   : > { %v1488_v57 = vrot.slane %v1487_v55, 4 }
 0x417   : > { %v1509_v59 = vrot.slane %v1508_v56, 4 }
 0x418   : > { %v1489_v62 = vmax.f32 %v1487_v55, %v1488_v57 }
 0x419   : > { %v1510_v48 = vmax.f32 %v1508_v56, %v1509_v59 }
 0x41a   : > { %v1490_v60 = vrot.slane %v1489_v62, 2 }
 0x41b   : > { %v1511_v63 = vrot.slane %v1510_v48, 2 }
 0x41c   : > { %v1491_v2 = vmax.f32 %v1489_v62, %v1490_v60 }
 0x41d   : > { %v1512_v61 = vmax.f32 %v1510_v48, %v1511_v63 }
 0x41e   : > { %v1492_v58 = vrot.slane %v1491_v2, 1 }
 0x41f   : > { %v1513_v52 = vrot.slane %v1512_v61, 1 }
 0x420   : > { %v1493_v31 = vmax.f32 %v1491_v2, %v1492_v58 }
 0x421   : > { %v1514_v21 = vmax.f32 %v1512_v61, %v1513_v52 }
 0x423   : > { %v1517_v9 = vcombine.low %v1493_v31, %v1514_v21 }
 0x425   : > { %v1524_v1 = vrot.slane %v1517_v9, %v1523_v25 }
 0x427   : > { %v1531_v15 = vrot.slane %v1524_v1, %v1523_v25 }
 0x429   : > { %1537 = vst.msk [vmem:[%s350_s27] sm:$0x3] %vm1535_vm1, %v1531_v15 }
 0x42a   : > { %1792 = shalt.err (!%p1789_p5)
}
 0x42b   : > { %s1793_s24 = scalar_lea.hbm %s2392_s16, 32  ;;  %s1797_s29 = scalar_lea.hbm %s2448_s9, 64 }
 0x42c   : > { %p1794_p6 = scmp.ne.s32.totalorder %s2392_s16, %s1793_s24  ;;  %p1798_p10 = scmp.lt.u32.totalorder %s2392_s16, %s2448_s9 }
 0x42d   : > { %p1799_p11 = scmp.lt.u32.totalorder %s1797_s29, %s1793_s24  ;;  %p1801_p13 = scmp.lt.u32.totalorder %s1793_s24, %s2392_s16 }
 0x42e   : > { %p1795_p7 = pnand %p1794_p6, %p1955_p4 }
 0x42f   : > { %p1800_p12 = por %p1799_p11, %p1798_p10 }
 0x430   : > { %p1796_p9 = pneg %p1795_p7 }
 0x431   : > { %p1802_p0 = por %p1801_p13, %p1800_p12 }
 0x433   : > { %p1803_p1 = pnand %p1802_p0, %p1796_p9 }
 0x435   : > { %1806 = shalt.err (!%p1803_p1)
}
 0x436   : > { %1678 = dma.vmem_to_hbm [thread:$0]  (%p1955_p4), %s2394_s28, 32, %s2392_s16, %s1539_s18  }
 0x437 PF: > { %p1684_p2 = scmp.ge.s32.totalorder %s1857_s14, 2  ;;  %s1567_s20 = sand.u32 1, %s1837_s30  }
 0x438   : > { %s1568_s23 = scalar_lea.sflag [#allocation3], %s1567_s20 }
 0x439   : > { %p1681_p3 = pnand %p1684_p2, %p1962_p8 }
 0x43b   : > { %1832 = dma.done.wait (!%p1681_p3), %s1568_s23, 32  }
 0x43c   : > { %1834 = vsyncadd (!%p1681_p3), %s1568_s23, 4294967264  ;;  %s22_s14 = sadd.s32 1, %s1857_s14   ;;  %s2451_s30 = smov %s1841_s10 }
 0x43d   : > { %p19_p5 = scmp.ge.s32.totalorder %s22_s14, 4   ;;  %s2452_s10 = smov %s1845_s11 }
 0x43e   : > { %s2453_s11 = smov %s1968_s22  ;;  %s2454_s12 = smov %s1853_s13 }
 0x43f   : > { %s2455_s13 = smov %s2457_s17  ;;  %21 = sbr.rel (!%p19_p5) target bundleno = 4 (0x4), region = 91 }
 0x446   :  { %1573 = vsyncpa [#allocation3], 1 }
 0x447   :  { %1575 = vsyncpa [#allocation3 + $0x1], 1 }

</bundles_post_ra>
